<compile_context>
chip_gen: v7x
topology: tpu7x:2x2x1
jax: 0.10.0
libtpu: 0.0.40
codegen_flags: <defaults>
</compile_context>

<pallas_src>
import functools

import numpy as np
import jax
import jax.numpy as jnp
from jax.experimental import pallas as pl
from jax.experimental.pallas import tpu as pltpu

LOG2PI = float(np.log(2.0 * np.pi))

TILE_N = 1024  # nodes per grid step (lanes); multiple of 128, sized well under
               # v7x's 64 MiB VMEM even with double-buffered in/out blocks.


# ---------------------------------------------------------------------------
# layout helpers
# ---------------------------------------------------------------------------
def _round_up(n, m):
    return ((n + m - 1) // m) * m


def _prep_cols(a, n_pad):
    """[N, F] (or [N]) -> f32 [F, n_pad]: nodes on lanes, zero-padded."""
    a = jnp.asarray(a, jnp.float32)
    if a.ndim == 1:
        a = a[:, None]
    a = a.T
    pad = n_pad - a.shape[1]
    if pad:
        a = jnp.pad(a, ((0, 0), (0, pad)))
    return a


def _spec(rows, tile):
    return pl.BlockSpec((rows, tile), lambda i: (0, i))


def _parallel():
    return pltpu.CompilerParams(dimension_semantics=("parallel",))


# ---------------------------------------------------------------------------
# continuous_var_bayesian_update:  mu = gamma*x + eps*sqrt(gamma*(1-gamma))
#   gamma = 1 - sigma1^(2t)
# ---------------------------------------------------------------------------
def _cont_update_kernel(t_ref, x_ref, eps_ref, mu_ref, gamma_ref, *, log_sigma1):
    t = t_ref[...]                                        # [1, T]
    gamma = 1.0 - jnp.exp((2.0 * log_sigma1) * t)         # 1 - sigma1**(2t)
    gamma = jnp.where(jnp.isnan(gamma), 0.0, gamma)       # PyTorch NaN sanitize
    cg = jnp.clip(gamma, 1e-8, 1.0 - 1e-8)
    variance = cg * (1.0 - cg)
    std = jnp.sqrt(jnp.maximum(variance, 0.0) + 1e-10)    # relu(var)+1e-10
    mu_ref[...] = gamma * x_ref[...] + eps_ref[...] * std
    gamma_ref[...] = gamma


def continuous_var_bayesian_update(t, sigma1, x, eps):
    N, D = x.shape
    n_pad = _round_up(N, TILE_N)
    mu_c, gamma_c = pl.pallas_call(
        functools.partial(_cont_update_kernel, log_sigma1=float(np.log(sigma1))),
        grid=(n_pad // TILE_N,),
        in_specs=[_spec(1, TILE_N), _spec(D, TILE_N), _spec(D, TILE_N)],
        out_specs=(_spec(D, TILE_N), _spec(1, TILE_N)),
        out_shape=(jax.ShapeDtypeStruct((D, n_pad), jnp.float32),
                   jax.ShapeDtypeStruct((1, n_pad), jnp.float32)),
        compiler_params=_parallel(),
    )(_prep_cols(t, n_pad), _prep_cols(x, n_pad), _prep_cols(eps, n_pad))
    return mu_c[:, :N].T, gamma_c[0, :N][:, None]


# ---------------------------------------------------------------------------
# discrete_var_bayesian_update: softmax(clip(beta*(K*x-1) + sqrt(|beta|K)*eps))
# ---------------------------------------------------------------------------
def _disc_update_kernel(t_ref, x_ref, eps_ref, theta_ref, *, beta1, K):
    t = t_ref[...]                                        # [1, T]
    beta = beta1 * t * t                                  # [1, T]
    mean_logits = beta * (K * x_ref[...] - 1.0)           # [K, T]
    std_logits = jnp.sqrt(jnp.abs(beta) * K)              # [1, T]
    mean_logits = jnp.where(jnp.isnan(mean_logits), 0.0, mean_logits)
    std_logits = jnp.where(jnp.isnan(std_logits), 1.0, std_logits)
    y = jnp.clip(mean_logits + std_logits * eps_ref[...], -10.0, 10.0)
    y = y - jnp.max(y, axis=0, keepdims=True)             # softmax over classes
    e = jnp.exp(y)
    denom = jnp.sum(e, axis=0, keepdims=True)
    theta_ref[...] = e * pl.reciprocal(denom, approx=True)


def discrete_var_bayesian_update(t, beta1, x, K, eps):
    N, Kc = x.shape
    n_pad = _round_up(N, TILE_N)
    theta_c = pl.pallas_call(
        functools.partial(_disc_update_kernel, beta1=float(beta1), K=int(K)),
        grid=(n_pad // TILE_N,),
        in_specs=[_spec(1, TILE_N), _spec(Kc, TILE_N), _spec(Kc, TILE_N)],
        out_specs=_spec(Kc, TILE_N),
        out_shape=jax.ShapeDtypeStruct((Kc, n_pad), jnp.float32),
        compiler_params=_parallel(),
    )(_prep_cols(t, n_pad), _prep_cols(x, n_pad), _prep_cols(eps, n_pad))
    return theta_c[:, :N].T


# ---------------------------------------------------------------------------
# ctime4continuous_loss:  -log(sigma1) * sigma1^(-2t) * ||x_pred - x||^2
# ---------------------------------------------------------------------------
def _ctime_cont_loss_kernel(t_ref, xp_ref, x_ref, loss_ref, *, log_sigma1):
    w = jnp.exp((-2.0 * log_sigma1) * t_ref[...])         # sigma1^(-2t), [1,T]
    d = xp_ref[...] - x_ref[...]
    sq = jnp.sum(d * d, axis=0, keepdims=True)            # [1, T]
    loss_ref[...] = (-log_sigma1) * w * sq


def ctime4continuous_loss(t, sigma1, x_pred, x):
    N, D = x.shape
    n_pad = _round_up(N, TILE_N)
    out = pl.pallas_call(
        functools.partial(_ctime_cont_loss_kernel, log_sigma1=float(np.log(sigma1))),
        grid=(n_pad // TILE_N,),
        in_specs=[_spec(1, TILE_N), _spec(D, TILE_N), _spec(D, TILE_N)],
        out_specs=_spec(1, TILE_N),
        out_shape=jax.ShapeDtypeStruct((1, n_pad), jnp.float32),
        compiler_params=_parallel(),
    )(_prep_cols(t, n_pad), _prep_cols(x_pred, n_pad), _prep_cols(x, n_pad))
    return out[0, :N]


# ---------------------------------------------------------------------------
# dtime4continuous_loss: N(1 - sigma1^(2/N)) / (2 sigma1^(2i/N) + 1e-8) * ||.||^2
# ---------------------------------------------------------------------------
def _dtime_cont_loss_kernel(i_ref, xp_ref, x_ref, loss_ref, *, log_sigma1,
                            Nsteps, weight_num):
    denom = 2.0 * jnp.exp((2.0 * log_sigma1 / Nsteps) * i_ref[...]) + 1e-8
    d = xp_ref[...] - x_ref[...]
    sq = jnp.sum(d * d, axis=0, keepdims=True)
    loss_ref[...] = (weight_num / denom) * sq


def dtime4continuous_loss(i, Nsteps, sigma1, x_pred, x):
    N, D = x.shape
    n_pad = _round_up(N, TILE_N)
    log_s1 = float(np.log(sigma1))
    weight_num = float(Nsteps * (1.0 - np.exp(2.0 * log_s1 / Nsteps)))
    out = pl.pallas_call(
        functools.partial(_dtime_cont_loss_kernel, log_sigma1=log_s1,
                          Nsteps=int(Nsteps), weight_num=weight_num),
        grid=(n_pad // TILE_N,),
        in_specs=[_spec(1, TILE_N), _spec(D, TILE_N), _spec(D, TILE_N)],
        out_specs=_spec(1, TILE_N),
        out_shape=jax.ShapeDtypeStruct((1, n_pad), jnp.float32),
        compiler_params=_parallel(),
    )(_prep_cols(i, n_pad), _prep_cols(x_pred, n_pad), _prep_cols(x, n_pad))
    return out[0, :N]


# ---------------------------------------------------------------------------
# ctime4discrete_loss:  K * beta1 * t * sum((e_x - e_hat)^2, -1)
# ---------------------------------------------------------------------------
def _ctime_disc_loss_kernel(t_ref, ex_ref, eh_ref, loss_ref, *, k_beta1):
    d = ex_ref[...] - eh_ref[...]
    sq = jnp.sum(d * d, axis=0, keepdims=True)
    loss_ref[...] = k_beta1 * t_ref[...] * sq


def ctime4discrete_loss(t, beta1, one_hot_x, p_0, K):
    N, Kc = one_hot_x.shape
    n_pad = _round_up(N, TILE_N)
    out = pl.pallas_call(
        functools.partial(_ctime_disc_loss_kernel, k_beta1=float(K) * float(beta1)),
        grid=(n_pad // TILE_N,),
        in_specs=[_spec(1, TILE_N), _spec(Kc, TILE_N), _spec(Kc, TILE_N)],
        out_specs=_spec(1, TILE_N),
        out_shape=jax.ShapeDtypeStruct((1, n_pad), jnp.float32),
        compiler_params=_parallel(),
    )(_prep_cols(t, n_pad), _prep_cols(one_hot_x, n_pad), _prep_cols(p_0, n_pad))
    return out[0, :N]


# ---------------------------------------------------------------------------
# dtime4discrete_loss: sample y ~ N(alpha(K e_x - 1), K|alpha|), then
#   L = -logsumexp_k[ log p_0[:,k] + log N(y ; alpha(K e_k - 1), K|alpha|) ]
#   return Nsteps * mean(L)
# Closed-form over classes:
#   sum_j (y_j - a(K d_jk - 1))^2 = ||y+a||^2 - 2aK (y_k + a) + a^2 K^2
#   (with u = y + a this is  uu - 2aK u_k + (aK)^2 )
# so no eye(K) constant and no O(K^2) unrolled loop is needed.
# ---------------------------------------------------------------------------
def _dtime_disc_loss_kernel(i_ref, ex_ref, p0_ref, eps_ref, out_ref,
                            *, K, Nsteps, beta1, n_valid, tile_n):
    step = pl.program_id(0)

    @pl.when(step == 0)
    def _():
        out_ref[...] = jnp.zeros_like(out_ref)

    i = i_ref[...]                                        # [1, T]
    alpha = (beta1 / float(Nsteps * Nsteps)) * (2.0 * i - 1.0)   # [1, T]
    ex = ex_ref[...]                                      # [K, T]
    var_y = K * jnp.abs(alpha)                            # std^2 = K|alpha|
    std_y = jnp.sqrt(var_y)                               # [1, T]
    y = alpha * (K * ex - 1.0) + std_y * eps_ref[...]     # [K, T]

    u = y + alpha                                         # [K, T]
    uu = jnp.sum(u * u, axis=0, keepdims=True)            # [1, T]
    inv_var = 1.0 / var_y                                 # [1, T]
    log_q = (-0.5 * K * LOG2PI
             - (0.5 * K) * jnp.log(var_y)
             - 0.5 * (uu - (2.0 * K) * alpha * u + (K * alpha) ** 2) * inv_var)
    # nan_to_num(nan=0, posinf=0, neginf=-1e8) as in PyTorch
    log_q = jnp.where(jnp.isnan(log_q), 0.0, log_q)
    log_q = jnp.where(log_q == jnp.inf, 0.0, log_q)
    log_q = jnp.where(log_q == -jnp.inf, -1e8, log_q)

    log_lik = jnp.log(jnp.maximum(p0_ref[...], 1e-20)) + log_q   # [K, T]
    m = jnp.max(log_lik, axis=0, keepdims=True)
    lse = m + jnp.log(jnp.sum(jnp.exp(log_lik - m), axis=0, keepdims=True))
    L = -lse                                              # [1, T]

    # mask out padded nodes, accumulate into the resident (1,1) output block
    idx = step * tile_n + jax.lax.broadcasted_iota(jnp.int32, L.shape, 1)
    L = jnp.where(idx < n_valid, L, 0.0)
    out_ref[...] += jnp.sum(L, axis=1, keepdims=True)

    @pl.when(step == pl.num_programs(0) - 1)
    def _():
        out_ref[...] = out_ref[...] * (float(Nsteps) / float(n_valid))


def dtime4discrete_loss(i, Nsteps, beta1, one_hot_x, p_0, K, eps):
    N, Kc = one_hot_x.shape
    n_pad = _round_up(N, TILE_N)
    out = pl.pallas_call(
        functools.partial(_dtime_disc_loss_kernel, K=int(K), Nsteps=int(Nsteps),
                          beta1=float(beta1), n_valid=int(N), tile_n=TILE_N),
        grid=(n_pad // TILE_N,),
        in_specs=[_spec(1, TILE_N), _spec(Kc, TILE_N),
                  _spec(Kc, TILE_N), _spec(Kc, TILE_N)],
        out_specs=pl.BlockSpec((1, 1), lambda i: (0, 0)),
        out_shape=jax.ShapeDtypeStruct((1, 1), jnp.float32),
        compiler_params=pltpu.CompilerParams(dimension_semantics=("arbitrary",)),
    )(_prep_cols(i, n_pad), _prep_cols(one_hot_x, n_pad),
      _prep_cols(p_0, n_pad), _prep_cols(eps, n_pad))
    return out[0, 0]


# ---------------------------------------------------------------------------
# Pure-JAX references (for correctness check).
# ---------------------------------------------------------------------------
def _ref_cont_update(t, sigma1, x, eps):
    gamma = 1.0 - sigma1 ** (2.0 * t)
    cg = jnp.clip(gamma, 1e-8, 1.0 - 1e-8)
    var = cg * (1.0 - cg)
    mu = gamma * x + eps * jnp.sqrt(jnp.maximum(var, 0.0) + 1e-10)
    return mu, gamma


def _ref_disc_update(t, beta1, x, K, eps):
    beta = beta1 * t ** 2
    y = beta * (K * x - 1.0) + jnp.sqrt(jnp.abs(beta) * K) * eps
    return jax.nn.softmax(jnp.clip(y, -10.0, 10.0), axis=-1)


def _ref_ctime_cont(t, sigma1, xp, x):
    w = sigma1 ** (-2.0 * t[:, 0])
    sq = jnp.sum((xp - x) ** 2, axis=-1)
    return -jnp.log(sigma1) * w * sq


def _ref_dtime_cont(i, Ns, sigma1, xp, x):
    w = Ns * (1.0 - sigma1 ** (2.0 / Ns)) / (2.0 * sigma1 ** (2.0 * i[:, 0] / Ns) + 1e-8)
    return w * jnp.sum((xp - x) ** 2, axis=-1)


def _ref_ctime_disc(t, beta1, ex, eh, K):
    return K * beta1 * t[:, 0] * jnp.sum((ex - eh) ** 2, axis=-1)


def _ref_dtime_disc(i, Ns, beta1, ex, p0, K, eps):
    alpha = beta1 * (2.0 * i - 1.0) / Ns ** 2                      # [N,1]
    y = alpha * (K * ex - 1.0) + jnp.sqrt(K * jnp.abs(alpha)) * eps
    eye = jnp.eye(K, dtype=jnp.float32)
    mean_l = alpha[:, :, None] * (K * eye[None] - 1.0)             # [N,K,K]
    std_l = jnp.sqrt(K * jnp.abs(alpha))[:, :, None]               # [N,1,1]
    log_q = jnp.sum(-0.5 * LOG2PI - jnp.log(std_l)
                    - 0.5 * ((y[:, None, :] - mean_l) / std_l) ** 2, axis=-1)
    log_lik = jnp.log(jnp.clip(p0, 1e-20, None)) + log_q
    L = -jax.scipy.special.logsumexp(log_lik, axis=-1)
    return Ns * jnp.mean(L)


# ---------------------------------------------------------------------------
if __name__ == "__main__":
    key = jax.random.PRNGKey(0)
    ks = jax.random.split(key, 10)

    N_nodes, D, K, Nsteps = 8, 4, 8, 10
    sigma1, beta1 = 0.02, 1.5

    t = jax.random.uniform(ks[0], (N_nodes, 1), jnp.float32, 0.05, 0.95)
    x = jax.random.normal(ks[1], (N_nodes, D), jnp.float32)
    x_pred = x + 0.1 * jax.random.normal(ks[2], (N_nodes, D), jnp.float32)
    eps_x = jax.random.normal(ks[3], (N_nodes, D), jnp.float32)

    labels = jax.random.randint(ks[4], (N_nodes,), 0, K)
    one_hot_x = jax.nn.one_hot(labels, K, dtype=jnp.float32)
    p_0 = jax.nn.softmax(jax.random.normal(ks[5], (N_nodes, K), jnp.float32), -1)
    eps_k = jax.random.normal(ks[6], (N_nodes, K), jnp.float32)

    i_step = jax.random.randint(ks[7], (N_nodes, 1), 1, Nsteps + 1).astype(jnp.float32)

    # 1. continuous bayesian update
    mu, gamma = continuous_var_bayesian_update(t, sigma1, x, eps_x)
    mu_r, gamma_r = _ref_cont_update(t, sigma1, x, eps_x)
    np.testing.assert_allclose(mu, mu_r, rtol=1e-2, atol=1e-4)
    np.testing.assert_allclose(gamma, gamma_r, rtol=1e-2, atol=1e-4)

    # 2. discrete bayesian update
    theta = discrete_var_bayesian_update(t, beta1, one_hot_x, K, eps_k)
    theta_r = _ref_disc_update(t, beta1, one_hot_x, K, eps_k)
    np.testing.assert_allclose(theta, theta_r, rtol=1e-2, atol=1e-4)

    # 3. continuous-time continuous loss
    l1 = ctime4continuous_loss(t, sigma1, x_pred, x)
    np.testing.assert_allclose(l1, _ref_ctime_cont(t, sigma1, x_pred, x),
                               rtol=1e-2, atol=1e-4)

    # 4. discrete-time continuous loss
    l2 = dtime4continuous_loss(i_step, Nsteps, sigma1, x_pred, x)
    np.testing.assert_allclose(l2, _ref_dtime_cont(i_step, Nsteps, sigma1, x_pred, x),
                               rtol=1e-2, atol=1e-4)

    # 5. continuous-time discrete loss
    l3 = ctime4discrete_loss(t, beta1, one_hot_x, p_0, K)
    np.testing.assert_allclose(l3, _ref_ctime_disc(t, beta1, one_hot_x, p_0, K),
                               rtol=1e-2, atol=1e-4)

    # 6. discrete-time discrete loss (analytic, closed-form over classes)
    l4 = dtime4discrete_loss(i_step, Nsteps, beta1, one_hot_x, p_0, K, eps_k)
    np.testing.assert_allclose(l4, _ref_dtime_disc(i_step, Nsteps, beta1,
                                                   one_hot_x, p_0, K, eps_k),
                               rtol=1e-2, atol=1e-3)

    jax.block_until_ready((mu, gamma, theta, l1, l2, l3, l4))
    print("KERNEL_OK")
</pallas_src>

<mosaic_0001>
module attributes {stable_mosaic.version = 11 : i64} {
  func.func @_cont_update_kernel(%arg0: i32, %arg1: memref<1x1024xf32, #tpu.memory_space<vmem>>, %arg2: memref<4x1024xf32, #tpu.memory_space<vmem>>, %arg3: memref<4x1024xf32, #tpu.memory_space<vmem>>, %arg4: memref<4x1024xf32, #tpu.memory_space<vmem>>, %arg5: memref<1x1024xf32, #tpu.memory_space<vmem>>) attributes {dimension_semantics = [#tpu.dimension_semantics<parallel>], iteration_bounds = array<i64: 1>, scalar_prefetch = 0 : i64, scratch_operands = 0 : i64, tpu.core_type = #tpu.core_type<tc>, window_params = [{transform_indices = @transform_0, window_bounds = array<i64: 1, 1024>}, {transform_indices = @transform_1, window_bounds = array<i64: 4, 1024>}, {transform_indices = @transform_2, window_bounds = array<i64: 4, 1024>}, {transform_indices = @transform_3, window_bounds = array<i64: 4, 1024>}, {transform_indices = @transform_4, window_bounds = array<i64: 1, 1024>}]} {
    %c0 = arith.constant 0 : index
    %c0_0 = arith.constant 0 : index
    %0 = vector.load %arg1[%c0, %c0_0] : memref<1x1024xf32, #tpu.memory_space<vmem>>, vector<1x1024xf32>
    %cst = arith.constant -7.82404613 : f32
    %1 = vector.broadcast %cst : f32 to vector<1x1024xf32>
    %2 = arith.mulf %1, %0 : vector<1x1024xf32>
    %3 = math.exp %2 : vector<1x1024xf32>
    %cst_1 = arith.constant 1.000000e+00 : f32
    %4 = vector.broadcast %cst_1 : f32 to vector<1x1024xf32>
    %5 = arith.subf %4, %3 : vector<1x1024xf32>
    %6 = arith.cmpf one, %5, %5 : vector<1x1024xf32>
    %cst_2 = arith.constant 0.000000e+00 : f32
    %7 = vector.broadcast %cst_2 : f32 to vector<1x1024xf32>
    %8 = arith.select %6, %7, %5 : vector<1x1024xi1>, vector<1x1024xf32>
    %cst_3 = arith.constant 9.99999993E-9 : f32
    %cst_4 = arith.constant 1.000000e+00 : f32
    %9 = vector.broadcast %cst_3 : f32 to vector<1x1024xf32>
    %10 = arith.maximumf %9, %8 : vector<1x1024xf32>
    %11 = vector.broadcast %cst_4 : f32 to vector<1x1024xf32>
    %12 = arith.minimumf %11, %10 : vector<1x1024xf32>
    %cst_5 = arith.constant 1.000000e+00 : f32
    %13 = vector.broadcast %cst_5 : f32 to vector<1x1024xf32>
    %14 = arith.subf %13, %12 : vector<1x1024xf32>
    %15 = arith.mulf %12, %14 : vector<1x1024xf32>
    %cst_6 = arith.constant 0.000000e+00 : f32
    %16 = vector.broadcast %cst_6 : f32 to vector<1x1024xf32>
    %17 = arith.maximumf %15, %16 : vector<1x1024xf32>
    %cst_7 = arith.constant 1.000000e-10 : f32
    %18 = vector.broadcast %cst_7 : f32 to vector<1x1024xf32>
    %19 = arith.addf %17, %18 : vector<1x1024xf32>
    %20 = math.sqrt %19 : vector<1x1024xf32>
    %c0_8 = arith.constant 0 : index
    %c0_9 = arith.constant 0 : index
    %21 = vector.load %arg2[%c0_8, %c0_9] : memref<4x1024xf32, #tpu.memory_space<vmem>>, vector<4x1024xf32>
    %22 = vector.broadcast %8 : vector<1x1024xf32> to vector<4x1024xf32>
    %23 = arith.mulf %22, %21 : vector<4x1024xf32>
    %c0_10 = arith.constant 0 : index
    %c0_11 = arith.constant 0 : index
    %24 = vector.load %arg3[%c0_10, %c0_11] : memref<4x1024xf32, #tpu.memory_space<vmem>>, vector<4x1024xf32>
    %25 = vector.broadcast %20 : vector<1x1024xf32> to vector<4x1024xf32>
    %26 = arith.mulf %24, %25 : vector<4x1024xf32>
    %27 = arith.addf %23, %26 : vector<4x1024xf32>
    %c0_12 = arith.constant 0 : index
    %c0_13 = arith.constant 0 : index
    %28 = vector.load %arg4[%c0_12, %c0_13] : memref<4x1024xf32, #tpu.memory_space<vmem>>, vector<4x1024xf32>
    tpu.vector_store %arg4[%c0_12, %c0_13], %27 {strides = array<i32>} : memref<4x1024xf32, #tpu.memory_space<vmem>>, vector<4x1024xf32>,
    %c0_14 = arith.constant 0 : index
    %c0_15 = arith.constant 0 : index
    %29 = vector.load %arg5[%c0_14, %c0_15] : memref<1x1024xf32, #tpu.memory_space<vmem>>, vector<1x1024xf32>
    tpu.vector_store %arg5[%c0_14, %c0_15], %8 {strides = array<i32>} : memref<1x1024xf32, #tpu.memory_space<vmem>>, vector<1x1024xf32>,
    return
  }
  func.func @transform_0(%arg0: i32) -> (i32, i32) {
    %c0_i32 = arith.constant 0 : i32
    %c0_i32_0 = arith.constant 0 : i32
    return %c0_i32, %arg0 : i32, i32
  }
  func.func @transform_1(%arg0: i32) -> (i32, i32) {
    %c0_i32 = arith.constant 0 : i32
    %c0_i32_0 = arith.constant 0 : i32
    return %c0_i32, %arg0 : i32, i32
  }
  func.func @transform_2(%arg0: i32) -> (i32, i32) {
    %c0_i32 = arith.constant 0 : i32
    %c0_i32_0 = arith.constant 0 : i32
    return %c0_i32, %arg0 : i32, i32
  }
  func.func @transform_3(%arg0: i32) -> (i32, i32) {
    %c0_i32 = arith.constant 0 : i32
    %c0_i32_0 = arith.constant 0 : i32
    return %c0_i32, %arg0 : i32, i32
  }
  func.func @transform_4(%arg0: i32) -> (i32, i32) {
    %c0_i32 = arith.constant 0 : i32
    %c0_i32_0 = arith.constant 0 : i32
    return %c0_i32, %arg0 : i32, i32
  }
}

</mosaic_0001>

<bundles_post_ra>
// kernel: tpu_custom_call.1
= control target key start
LH: loop header
LB: loop body
LE: loop exit
PB: predicated region body
PF: predicated region fallthrough
CT: control target
= control target key end

     0   :  { %10 = vsyncpa [#allocation3], 0  ;;  %s479_s0 = inlined_call_operand.hbm [shape: f32[1,1024], index: 0, kind: input, shape index: {}]   ;;  %s480_s1 = inlined_call_operand.hbm [shape: f32[4,1024], index: 1, kind: input, shape index: {}]   ;;  %s481_s2 = inlined_call_operand.hbm [shape: f32[4,1024], index: 2, kind: input, shape index: {}]   ;;  %s482_s3 = inlined_call_operand.hbm [shape: f32[4,1024], index: 3, kind: output, shape index: {0}]   ;;  %s483_s4 = inlined_call_operand.hbm [shape: f32[1,1024], index: 4, kind: output, shape index: {1}]  }
   0x1   :  { %11 = vsyncpa [#allocation6], 0 }
   0x2   :  { %12 = vsyncpa [#allocation4], 0 }
   0x3   :  { %13 = vsyncpa [#allocation10], 0  ;;  %s389_s15 = smov [#allocation5]   ;;  %s390_s17 = smov [#allocation2]  }
   0x4   :  { %s30_s16 = sshll.u32 %s389_s15, 4  ;;  %s20_s18 = sshll.u32 %s390_s17, 4  ;;  %s31_s16 = int_to_ptr.vmem [resolvable:$true] %s30_s16  ;;  %s21_s18 = int_to_ptr.vmem [resolvable:$true] %s20_s18 }
   0x5   :  { %s271_s21 = scalar_lea.hbm %s480_s1, 512 }
   0x6   :  { %p272_p0 = scmp.ne.s32.totalorder %s480_s1, %s271_s21  ;;  %p275_p1 = scmp.lt.u32.totalorder %s271_s21, %s480_s1 }
   0x8   :  { %p277_p2 = pnand %p275_p1, %p272_p0 }
   0xa   :  { %280 = shalt.err (!%p277_p2)
}
   0xb   :  { %s281_s26 = scalar_lea.vmem %s31_s16, 512  ;;  %p286_p4 = scmp.lt.s32.totalorder %s31_s16, %s31_s16 }
   0xc   :  { %p282_p3 = scmp.ne.s32.totalorder %s31_s16, %s281_s26  ;;  %p287_p5 = scmp.lt.s32.totalorder %s281_s26, %s281_s26 }
   0xe   :  { %p288_p6 = por %p287_p5, %p286_p4 }
  0x10   :  { %p289_p7 = pnand %p288_p6, %p282_p3 }
  0x12   :  { %292 = shalt.err (!%p289_p7)
}
  0x13   :  { %33 = dma.hbm_to_vmem [thread:$0]  %s480_s1, 512, %s31_s16, [#allocation6]  }
  0x14   :  { %s293_s5 = scalar_lea.hbm %s479_s0, 128 }
  0x15   :  { %p294_p8 = scmp.ne.s32.totalorder %s479_s0, %s293_s5  ;;  %p297_p9 = scmp.lt.u32.totalorder %s293_s5, %s479_s0 }
  0x17   :  { %p299_p10 = pnand %p297_p9, %p294_p8 }
  0x19   :  { %302 = shalt.err (!%p299_p10)
}
  0x1a   :  { %s303_s10 = scalar_lea.vmem %s21_s18, 128  ;;  %p308_p12 = scmp.lt.s32.totalorder %s21_s18, %s21_s18 }
  0x1b   :  { %p304_p11 = scmp.ne.s32.totalorder %s21_s18, %s303_s10  ;;  %p309_p13 = scmp.lt.s32.totalorder %s303_s10, %s303_s10 }
  0x1d   :  { %p310_p0 = por %p309_p13, %p308_p12 }
  0x1f   :  { %p311_p1 = pnand %p310_p0, %p304_p11 }
  0x21   :  { %314 = shalt.err (!%p311_p1)
}
  0x22   :  { %23 = dma.hbm_to_vmem [thread:$0]  %s479_s0, 128, %s21_s18, [#allocation3]  }
  0x23   :  { %s391_s12 = smov [#allocation7]   ;;  %s315_s16 = scalar_lea.hbm %s481_s2, 512 }
  0x24   :  { %s40_s13 = sshll.u32 %s391_s12, 4  ;;  %p316_p2 = scmp.ne.s32.totalorder %s481_s2, %s315_s16  ;;  %s41_s13 = int_to_ptr.vmem [resolvable:$true] %s40_s13 }
  0x25   :  { %p319_p3 = scmp.lt.u32.totalorder %s315_s16, %s481_s2 }
  0x27   :  { %p321_p4 = pnand %p319_p3, %p316_p2 }
  0x29   :  { %324 = shalt.err (!%p321_p4)
}
  0x2a   :  { %s325_s22 = scalar_lea.vmem %s41_s13, 512  ;;  %p330_p6 = scmp.lt.s32.totalorder %s41_s13, %s41_s13 }
  0x2b   :  { %p326_p5 = scmp.ne.s32.totalorder %s41_s13, %s325_s22  ;;  %p331_p7 = scmp.lt.s32.totalorder %s325_s22, %s325_s22 }
  0x2d   :  { %p332_p8 = por %p331_p7, %p330_p6 }
  0x2f   :  { %p333_p9 = pnand %p332_p8, %p326_p5 }
  0x31   :  { %336 = shalt.err (!%p333_p9)
}
  0x32   :  { %43 = dma.hbm_to_vmem [thread:$0]  %s481_s2, 512, %s41_s13, [#allocation6]  }
  0x33   :  { %381 = dma.done.wait [#allocation3], 128  }
  0x34   :  { %382 = vsyncadd [#allocation3], 4294967168 }
  0x35   :  { %383 = dma.done.wait [#allocation6], 1024  }
  0x36   :  { %384 = vsyncadd [#allocation6], 4294966272  ;;  %v53_v0 = vld [vmem:[#allocation2] sm:$0xff]  ;;  %s392_s23 = smov [#allocation9]  }
  0x37   :  { %v54_v1 = vmul.f32 -7.824046, %v53_v0  ;;  %s244_s24 = sshll.u32 %s392_s23, 4  ;;  %s245_s24 = int_to_ptr.vmem [resolvable:$true] %s244_s24 }
  0x38   :  { %s337_s25 = scalar_lea.vmem %s245_s24, 128  ;;  %p342_p11 = scmp.lt.s32.totalorder %s245_s24, %s245_s24 }
  0x39   :  { %v55_v2 = vmul.f32 1.442695, %v54_v1  ;;  %p338_p10 = scmp.ne.s32.totalorder %s245_s24, %s337_s25  ;;  %p343_p12 = scmp.lt.s32.totalorder %s337_s25, %s337_s25 }
  0x3b   :  { %267 = vpow2.f32 %v55_v2  ;;  %p344_p13 = por %p343_p12, %p342_p11 }
  0x3d   :  { %p345_p0 = pnand %p344_p13, %p338_p10 }
  0x45   :  { %v268_v3 = vpop.eup %267 }
  0x46   :  { %v57_v4 = vsub.f32 1.0, %v268_v3 }
  0x48   :  { %vm58_vm0 = vcmp.ne.f32.partialorder %v57_v4, %v57_v4 }
  0x49   :  { %v59_v5 = vsel %vm58_vm0, 0.0, %v57_v4 }
  0x4a   :  { %v60_v6 = vmax.f32 %v59_v5, 1e-08  ;;  %227 = vst [vmem:[#allocation9] sm:$0xff] %v59_v5 }
  0x4b   :  { %348 = shalt.err (!%p345_p0)
}
  0x4c   :  { %s349_s27 = scalar_lea.hbm %s483_s4, 128 }
  0x4d   :  { %p350_p1 = scmp.ne.s32.totalorder %s483_s4, %s349_s27  ;;  %p353_p2 = scmp.lt.u32.totalorder %s349_s27, %s483_s4 }
  0x4f   :  { %p355_p3 = pnand %p353_p2, %p350_p1 }
  0x51   :  { %358 = shalt.err (!%p355_p3)
}
  0x52   :  { %247 = dma.vmem_to_hbm [thread:$0]  %s245_s24, 128, %s483_s4, [#allocation10]   ;;  %v61_v7 = vmin.f32 %v60_v6, 1.0  ;;  %v78_v12 = vlaneseq  ;;  %v73_v14 = vld [vmem:[#allocation5] sm:$0xff]  ;;  %v74_v17 = vld [vmem:[#allocation5 + $0x8] sm:$0xff]  ;;  %v75_v20 = vld [vmem:[#allocation5 + $0x10] sm:$0xff] }
  0x53   :  { %v76_v23 = vld [vmem:[#allocation5 + $0x18] sm:$0xff]  ;;  %v122_v29 = vcombine.high %v73_v14, %v73_v14  ;;  %v123_v30 = vcombine.high %v74_v17, %v74_v17  ;;  %v124_v33 = vcombine.high %v75_v20, %v75_v20  ;;  %v138_v47 = vld [vmem:[#allocation7] sm:$0xff]  ;;  %v139_v48 = vld [vmem:[#allocation7 + $0x8] sm:$0xff]  ;;  %s393_s4 = smov [#allocation8]  }
  0x54   :  { %v62_v8 = vsub.f32 1.0, %v61_v7  ;;  %v79_v13 = vshrl.u32 %v78_v12, 7  ;;  %v125_v34 = vcombine.high %v76_v23, %v76_v23  ;;  %v140_v57 = vld [vmem:[#allocation7 + $0x10] sm:$0xff]  ;;  %v141_v58 = vld [vmem:[#allocation7 + $0x18] sm:$0xff]  ;;  %s234_s8 = sshll.u32 %s393_s4, 4  ;;  %s235_s8 = int_to_ptr.vmem [resolvable:$true] %s234_s8 }
  0x55   :  { %s359_s9 = scalar_lea.vmem %s235_s8, 512  ;;  %p364_p5 = scmp.lt.s32.totalorder %s235_s8, %s235_s8 }
  0x56   :  { %v63_v9 = vmul.f32 %v62_v8, %v61_v7  ;;  %v80_v15 = vsub.s32 0, %v79_v13  ;;  %v84_v16 = vsub.s32 1, %v79_v13  ;;  %v88_v18 = vsub.s32 2, %v79_v13  ;;  %p360_p4 = scmp.ne.s32.totalorder %s235_s8, %s359_s9  ;;  %p365_p6 = scmp.lt.s32.totalorder %s359_s9, %s359_s9 }
  0x57   :  { %v92_v19 = vsub.s32 3, %v79_v13  ;;  %v96_v21 = vsub.s32 4, %v79_v13  ;;  %v100_v22 = vsub.s32 5, %v79_v13  ;;  %v104_v26 = vsub.s32 6, %v79_v13 }
  0x58   :  { %v64_v10 = vmax.f32 %v63_v9, 0.0  ;;  %v108_v27 = vsub.s32 7, %v79_v13  ;;  %v81_v31 = vrot.slane %v59_v5, %v80_v15  ;;  %v85_v32 = vrot.slane %v59_v5, %v84_v16  ;;  %p366_p7 = por %p365_p6, %p364_p5 }
  0x59   :  { %v89_v36 = vrot.slane %v59_v5, %v88_v18  ;;  %v93_v37 = vrot.slane %v59_v5, %v92_v19  ;;  %v97_v38 = vrot.slane %v59_v5, %v96_v21  ;;  %v101_v40 = vrot.slane %v59_v5, %v100_v22 }
  0x5a   :  { %v65_v11 = vadd.f32 1e-10, %v64_v10  ;;  %v105_v41 = vrot.slane %v59_v5, %v104_v26  ;;  %v109_v42 = vrot.slane %v59_v5, %v108_v27  ;;  %v130_v53 = vmul.f32 %v81_v31, %v73_v14  ;;  %p367_p8 = pnand %p366_p7, %p360_p4 }
  0x5b   :  { %v132_v55 = vmul.f32 %v89_v36, %v74_v17  ;;  %v134_v59 = vmul.f32 %v97_v38, %v75_v20  ;;  %v131_v63 = vmul.f32 %v122_v29, %v85_v32  ;;  %v133_v1 = vmul.f32 %v123_v30, %v93_v37 }
  0x5c   :  { %269 = vrsqrt.f32 %v65_v11  ;;  %vm68_vm1 = vcmp.eq.f32.partialorder %v65_v11, inf  ;;  %v71_v25 = vand.u32 2147483648, %v65_v11  ;;  %vm70_vm2 = vcmp.eq.f32.partialorder %v65_v11, 0.0 }
  0x5d   :  { %v136_v61 = vmul.f32 %v105_v41, %v76_v23  ;;  %v135_v3 = vmul.f32 %v124_v33, %v101_v40  ;;  %v137_v5 = vmul.f32 %v125_v34, %v109_v42 }
  0x66   :  { %v270_v24 = vpop.eup %269 }
  0x67   :  { %v67_v28 = vmul.f32 %v270_v24, %v65_v11 }
  0x69   :  { %v69_v35 = vsel %vm68_vm1, %v65_v11, %v67_v28 }
  0x6a   :  { %v72_v39 = vsel %vm70_vm2, %v71_v25, %v69_v35 }
  0x6b   :  { %v146_v43 = vrot.slane %v72_v39, %v80_v15  ;;  %v150_v44 = vrot.slane %v72_v39, %v84_v16  ;;  %v154_v45 = vrot.slane %v72_v39, %v88_v18  ;;  %v158_v46 = vrot.slane %v72_v39, %v92_v19 }
  0x6c   :  { %v162_v49 = vrot.slane %v72_v39, %v96_v21  ;;  %v166_v50 = vrot.slane %v72_v39, %v100_v22  ;;  %v170_v51 = vrot.slane %v72_v39, %v104_v26  ;;  %v174_v52 = vrot.slane %v72_v39, %v108_v27 }
  0x6d   :  { %v175_v54 = vcombine.low %v146_v43, %v150_v44  ;;  %v176_v56 = vcombine.low %v154_v45, %v158_v46 }
  0x6e   :  { %v177_v60 = vcombine.low %v162_v49, %v166_v50  ;;  %v178_v62 = vcombine.low %v170_v51, %v174_v52 }
  0x6f   :  { %v183_v0 = vmul.f32 %v175_v54, %v138_v47  ;;  %v184_v2 = vmul.f32 %v176_v56, %v139_v48 }
  0x70   :  { %v185_v4 = vmul.f32 %v177_v60, %v140_v57  ;;  %v186_v6 = vmul.f32 %v178_v62, %v141_v58 }
  0x71   :  { %v191_v7 = vcombine.high %v183_v0, %v183_v0  ;;  %v199_v8 = vadd.f32 %v183_v0, %v130_v53  ;;  %v192_v9 = vcombine.high %v184_v2, %v184_v2  ;;  %v201_v10 = vadd.f32 %v184_v2, %v132_v55 }
  0x72   :  { %v193_v11 = vcombine.high %v185_v4, %v185_v4  ;;  %v203_v12 = vadd.f32 %v185_v4, %v134_v59  ;;  %v194_v13 = vcombine.high %v186_v6, %v186_v6  ;;  %v205_v14 = vadd.f32 %v186_v6, %v136_v61 }
  0x73   :  { %v200_v15 = vadd.f32 %v191_v7, %v131_v63  ;;  %v202_v16 = vadd.f32 %v192_v9, %v133_v1 }
  0x74   :  { %v204_v17 = vadd.f32 %v193_v11, %v135_v3  ;;  %v206_v18 = vadd.f32 %v194_v13, %v137_v5 }
  0x75   :  { %v215_v19 = vcombine.low %v199_v8, %v200_v15  ;;  %v216_v20 = vcombine.low %v201_v10, %v202_v16 }
  0x76   :  { %v217_v21 = vcombine.low %v203_v12, %v204_v17  ;;  %v218_v22 = vcombine.low %v205_v14, %v206_v18 }
  0x77   :  { %223 = vst [vmem:[#allocation8] sm:$0xff] %v215_v19  ;;  %224 = vst [vmem:[#allocation8 + $0x8] sm:$0xff] %v216_v20 }
  0x78   :  { %225 = vst [vmem:[#allocation8 + $0x10] sm:$0xff] %v217_v21  ;;  %226 = vst [vmem:[#allocation8 + $0x18] sm:$0xff] %v218_v22 }
  0x79   :  { %370 = shalt.err (!%p367_p8)
}
  0x7a   :  { %s371_s11 = scalar_lea.hbm %s482_s3, 512 }
  0x7b   :  { %p372_p9 = scmp.ne.s32.totalorder %s482_s3, %s371_s11  ;;  %p375_p10 = scmp.lt.u32.totalorder %s371_s11, %s482_s3 }
  0x7d   :  { %p377_p11 = pnand %p375_p10, %p372_p9 }
  0x7f   :  { %380 = shalt.err (!%p377_p11)
}
  0x80   :  { %237 = dma.vmem_to_hbm [thread:$0]  %s235_s8, 512, %s482_s3, [#allocation4]  }
  0x81   :  { %385 = dma.done.wait [#allocation4], 512  }
  0x82   :  { %386 = vsyncadd [#allocation4], 4294966784 }
  0x83   :  { %387 = dma.done.wait [#allocation10], 128  }
  0x84   :  { %388 = vsyncadd [#allocation10], 4294967168 }
  0x85   :  { %254 = vsyncpa [#allocation3], 1 }
  0x86   :  { %255 = vsyncpa [#allocation6], 1 }
  0x87   :  { %256 = vsyncpa [#allocation4], 1 }
  0x88   :  { %257 = vsyncpa [#allocation10], 1 }

</bundles_post_ra>
